<compile_context>
chip_gen: v6e
topology: v6e:2x2x1
jax: 0.10.0
libtpu: 0.0.40
codegen_flags: <defaults>
</compile_context>

<pallas_src>
import math

import jax
import jax.numpy as jnp
from jax.experimental import pallas as pl
from jax.experimental.pallas import tpu as pltpu


_COLS = 512                     # lane-dense last dim (multiple of 128)
_TARGET_BLOCK_BYTES = 2 << 20   # ~2 MiB per block (see header comment)


def _h_sigmoid_kernel(x_ref, o_ref):
    x = x_ref[...]
    # relu6(x + 3) / 6  ==  clip(x + 3, 0, 6) * (1/6), in the native dtype.
    o_ref[...] = (jnp.clip(x + 3.0, 0.0, 6.0) * (1.0 / 6.0)).astype(o_ref.dtype)


def _round_up(v, m):
    return ((v + m - 1) // m) * m


def h_sigmoid(x):
    """Hard sigmoid (relu6(x+3)/6) on an any-shape tensor via a Pallas TPU kernel."""
    orig_shape = x.shape
    if not jnp.issubdtype(x.dtype, jnp.floating):
        # PyTorch's (relu6(x+3))/6 returns float; mirror that for int inputs.
        x = x.astype(jnp.float32)
    dtype = x.dtype
    itemsize = jnp.dtype(dtype).itemsize
    total = math.prod(orig_shape) if orig_shape else 1
    flat = x.reshape(total)

    compiler_params = pltpu.CompilerParams(dimension_semantics=("parallel",))

    if total % _COLS == 0:
        # Lane-dense 2-D view: every block spans the full 512-wide last dim so
        # each DMA is one contiguous HBM stream and stores are unmasked.
        rows = total // _COLS
        if rows <= 8:
            block_rows = rows                       # single full-array block
        else:
            block_rows = max(8, (_TARGET_BLOCK_BYTES // (_COLS * itemsize)) // 8 * 8)
            block_rows = min(block_rows, _round_up(rows, 8))
            if pl.cdiv(rows, block_rows) < 2:
                # Keep >= 2 grid steps so v7x's two TensorCores both get work.
                block_rows = max(8, _round_up(pl.cdiv(rows, 2), 8))
        grid = (pl.cdiv(rows, block_rows),)
        out2d = pl.pallas_call(
            _h_sigmoid_kernel,
            out_shape=jax.ShapeDtypeStruct((rows, _COLS), dtype),
            grid=grid,
            in_specs=[pl.BlockSpec((block_rows, _COLS), lambda i: (i, 0))],
            out_specs=pl.BlockSpec((block_rows, _COLS), lambda i: (i, 0)),
            compiler_params=compiler_params,
        )(flat.reshape(rows, _COLS))
        return out2d.reshape(orig_shape)

    # Ragged total: stream the flat 1-D view directly (no pad / trim HBM
    # passes); only the final block's stores are masked.
    if total <= 1024:
        block_elems = total                          # single full-array block
    else:
        block_elems = max(1024, (_TARGET_BLOCK_BYTES // itemsize) // 1024 * 1024)
        block_elems = min(block_elems, _round_up(total, 1024))
        if pl.cdiv(total, block_elems) < 2:
            block_elems = max(1024, _round_up(pl.cdiv(total, 2), 1024))
    grid = (pl.cdiv(total, block_elems),)
    out_flat = pl.pallas_call(
        _h_sigmoid_kernel,
        out_shape=jax.ShapeDtypeStruct((total,), dtype),
        grid=grid,
        in_specs=[pl.BlockSpec((block_elems,), lambda i: (i,))],
        out_specs=pl.BlockSpec((block_elems,), lambda i: (i,)),
        compiler_params=compiler_params,
    )(flat)
    return out_flat.reshape(orig_shape)


def _ref_h_sigmoid(x):
    xf = x.astype(jnp.float32)
    return (jnp.clip(xf + 3.0, 0.0, 6.0) / 6.0).astype(x.dtype)


if __name__ == "__main__":
    key = jax.random.PRNGKey(0)

    # Primary test: NCHW shape matching the PyTorch module's typical input.
    # total = 2048 -> lane-dense 2-D path, single (4, 512) block.
    x = jax.random.normal(key, (2, 4, 16, 16), dtype=jnp.float32) * 4.0
    y = jax.block_until_ready(h_sigmoid(x))
    assert y.shape == x.shape and y.dtype == x.dtype
    assert jnp.allclose(y, _ref_h_sigmoid(x), atol=1e-5), "mismatch vs reference (f32)"

    # Multi-block 2-D path: total % 512 == 0, rows = 128 -> grid of 2 blocks.
    key1 = jax.random.PRNGKey(1)
    x1 = jax.random.normal(key1, (4, 16, 32, 32), dtype=jnp.float32) * 4.0
    y1 = jax.block_until_ready(h_sigmoid(x1))
    assert y1.shape == x1.shape
    assert jnp.allclose(y1, _ref_h_sigmoid(x1), atol=1e-5), "mismatch vs reference (f32 tiled)"

    # Ragged + bf16: total % 512 != 0 -> flat 1-D path, 2 blocks, masked tail,
    # native bf16 compute.
    key2 = jax.random.PRNGKey(2)
    x2 = (jax.random.normal(key2, (3, 5, 67, 129), dtype=jnp.float32) * 4.0).astype(jnp.bfloat16)
    y2 = jax.block_until_ready(h_sigmoid(x2))
    assert y2.shape == x2.shape and y2.dtype == x2.dtype
    assert jnp.allclose(
        y2.astype(jnp.float32), _ref_h_sigmoid(x2).astype(jnp.float32), atol=1e-2
    ), "mismatch vs reference (bf16 ragged)"

    print("KERNEL_OK")
</pallas_src>

<mosaic_0001>
module attributes {stable_mosaic.version = 11 : i64} {
  func.func @_h_sigmoid_kernel(%arg0: i32, %arg1: memref<4x512xf32, #tpu.memory_space<vmem>>, %arg2: memref<4x512xf32, #tpu.memory_space<vmem>>) attributes {dimension_semantics = [#tpu.dimension_semantics<parallel>], iteration_bounds = array<i64: 1>, scalar_prefetch = 0 : i64, scratch_operands = 0 : i64, tpu.core_type = #tpu.core_type<tc>, window_params = [{transform_indices = @transform_0, window_bounds = array<i64: 4, 512>}, {transform_indices = @transform_1, window_bounds = array<i64: 4, 512>}]} {
    %c0 = arith.constant 0 : index
    %c0_0 = arith.constant 0 : index
    %0 = vector.load %arg1[%c0, %c0_0] : memref<4x512xf32, #tpu.memory_space<vmem>>, vector<4x512xf32>
    %cst = arith.constant 3.000000e+00 : f32
    %1 = vector.broadcast %cst : f32 to vector<4x512xf32>
    %2 = arith.addf %0, %1 : vector<4x512xf32>
    %cst_1 = arith.constant 0.000000e+00 : f32
    %cst_2 = arith.constant 6.000000e+00 : f32
    %3 = vector.broadcast %cst_1 : f32 to vector<4x512xf32>
    %4 = arith.maximumf %3, %2 : vector<4x512xf32>
    %5 = vector.broadcast %cst_2 : f32 to vector<4x512xf32>
    %6 = arith.minimumf %5, %4 : vector<4x512xf32>
    %cst_3 = arith.constant 0.166666672 : f32
    %7 = vector.broadcast %cst_3 : f32 to vector<4x512xf32>
    %8 = arith.mulf %6, %7 : vector<4x512xf32>
    %c0_4 = arith.constant 0 : index
    %c0_5 = arith.constant 0 : index
    %9 = vector.load %arg2[%c0_4, %c0_5] : memref<4x512xf32, #tpu.memory_space<vmem>>, vector<4x512xf32>
    tpu.vector_store %arg2[%c0_4, %c0_5], %8 {strides = array<i32>} : memref<4x512xf32, #tpu.memory_space<vmem>>, vector<4x512xf32>,
    return
  }
  func.func @transform_0(%arg0: i32) -> (i32, i32) {
    %c0_i32 = arith.constant 0 : i32
    %c0_i32_0 = arith.constant 0 : i32
    return %arg0, %c0_i32 : i32, i32
  }
  func.func @transform_1(%arg0: i32) -> (i32, i32) {
    %c0_i32 = arith.constant 0 : i32
    %c0_i32_0 = arith.constant 0 : i32
    return %arg0, %c0_i32 : i32, i32
  }
}

</mosaic_0001>

<bundles_post_ra>
// kernel: tpu_custom_call.1
= control target key start
LH: loop header
LB: loop body
LE: loop exit
PB: predicated region body
PF: predicated region fallthrough
CT: control target
= control target key end

     0   :  { %6 = vsyncpa [#allocation3], 0  ;;  %s112_s0 = inlined_call_operand.hbm [shape: f32[4,512], index: 0, kind: input, shape index: {}]   ;;  %s113_s1 = inlined_call_operand.hbm [shape: f32[4,512], index: 1, kind: output, shape index: {}]  }
   0x1   :  { %7 = vsyncpa [#allocation4], 0  ;;  %s94_s6 = smov [#allocation2]  }
   0x2   :  { %s14_s7 = sshll.u32 %s94_s6, 4  ;;  %s15_s7 = int_to_ptr.vmem [resolvable:$true] %s14_s7 }
   0x3   :  { %s58_s8 = scalar_lea.vmem %s15_s7, 256  ;;  %p63_p1 = scmp.lt.s32.totalorder %s15_s7, %s15_s7 }
   0x4   :  { %p59_p0 = scmp.ne.s32.totalorder %s15_s7, %s58_s8  ;;  %p64_p2 = scmp.lt.s32.totalorder %s58_s8, %s58_s8 }
   0x6   :  { %p65_p3 = por %p64_p2, %p63_p1 }
   0x8   :  { %p66_p4 = pnand %p65_p3, %p59_p0 }
   0xa   :  { %69 = shalt.err (!%p66_p4)
}
   0xb   :  { %17 = dma.hbm_to_vmem [thread:$0]  %s112_s0, 256, %s15_s7, [#allocation3]  }
   0xc   :  { %90 = dma.done.wait [#allocation3], 256  }
   0xd   :  { %91 = vsyncadd [#allocation3], 4294967040  ;;  %v21_v0 = vld [vmem:[#allocation2] sm:$0xff]  ;;  %v22_v1 = vld [vmem:[#allocation2 + $0x8] sm:$0xff]  ;;  %s95_s11 = smov [#allocation5]  }
   0xe   :  { %v23_v2 = vadd.f32 3.0, %v21_v0  ;;  %v24_v3 = vadd.f32 3.0, %v22_v1  ;;  %s39_s12 = sshll.u32 %s95_s11, 4  ;;  %s40_s12 = int_to_ptr.vmem [resolvable:$true] %s39_s12 }
   0xf   :  { %s70_s13 = scalar_lea.vmem %s40_s12, 256  ;;  %p75_p6 = scmp.lt.s32.totalorder %s40_s12, %s40_s12 }
  0x10   :  { %v25_v4 = vmax.f32 %v23_v2, 0.0  ;;  %v26_v5 = vmax.f32 %v24_v3, 0.0  ;;  %p71_p5 = scmp.ne.s32.totalorder %s40_s12, %s70_s13  ;;  %p76_p7 = scmp.lt.s32.totalorder %s70_s13, %s70_s13 }
  0x12   :  { %v27_v6 = vmin.f32 %v25_v4, 6.0  ;;  %v28_v7 = vmin.f32 %v26_v5, 6.0  ;;  %p77_p8 = por %p76_p7, %p75_p6 }
  0x14   :  { %v29_v8 = vmul.f32 0.16666667, %v27_v6  ;;  %v30_v9 = vmul.f32 0.16666667, %v28_v7  ;;  %p78_p9 = pnand %p77_p8, %p71_p5 }
  0x16   :  { %31 = vst [vmem:[#allocation5] sm:$0xff] %v29_v8  ;;  %32 = vst [vmem:[#allocation5 + $0x8] sm:$0xff] %v30_v9 }
  0x17   :  { %81 = shalt.err (!%p78_p9)
}
  0x18   :  { %42 = dma.vmem_to_hbm [thread:$0]  %s40_s12, 256, %s113_s1, [#allocation4]  }
  0x19   :  { %92 = dma.done.wait [#allocation4], 256  }
  0x1a   :  { %93 = vsyncadd [#allocation4], 4294967040 }
  0x1b   :  { %46 = vsyncpa [#allocation3], 1 }
  0x1c   :  { %47 = vsyncpa [#allocation4], 1 }

</bundles_post_ra>
